<compile_context>
chip_gen: v5e
topology: v5e:2x2
jax: 0.10.0
libtpu: 0.0.40
codegen_flags: <defaults>
</compile_context>

<pallas_src>
import functools

import jax
import jax.numpy as jnp
from jax.experimental import pallas as pl
from jax.experimental.pallas import tpu as pltpu


# ----------------------------------------------------------------------------
# Pallas kernel: single invocation (no grid).  Everything is VMEM-resident.
# ----------------------------------------------------------------------------
def gru_fused_kernel(tok_ref,    # (T*B, 1) int32  time-major token ids
                     emb_ref,    # (V+1, E)        embedding table (pad row 0)
                     wi_ref,     # (E, 3H)         fused [W_ir | W_iz | W_in]
                     wh_ref,     # (H, 3H)         fused [W_hr | W_hz | W_hn]
                     bi_ref,     # (1, 3H)         fused [b_ir | b_iz | b_in]
                     bh_ref,     # (1, 3H)         fused [b_hr | b_hz | b_hn]
                     wout_ref,   # (H, V)
                     bout_ref,   # (1, V)
                     out_ref,    # (T*B, V)        logits, single store
                     hs_ref,     # scratch (T*B, H) hidden-state history
                     *, T, B, H, VOCAB_ROWS):
    tb = tok_ref.shape[0]

    # In-kernel embedding "gather": one-hot built from an iota compare, then an
    # MXU matmul against the table.  Zero padding row => padding token -> 0s.
    vocab_ids = jax.lax.broadcasted_iota(jnp.int32, (tb, VOCAB_ROWS), 1)
    one_hot = (tok_ref[...] == vocab_ids).astype(jnp.float32)     # (T*B, V+1)
    x = jnp.dot(one_hot, emb_ref[...],
                preferred_element_type=jnp.float32)               # (T*B, E)

    # Hoisted input projection for all time steps: one (T*B,E)@(E,3H) pass.
    xproj = (jnp.dot(x, wi_ref[...], preferred_element_type=jnp.float32)
             + bi_ref[...])                                       # (T*B, 3H)

    wh = wh_ref[...]                                              # (H, 3H)
    bh = bh_ref[...]                                              # (1, 3H)

    # Short, static recurrence: unrolled Python loop, one fused h@Wh per step.
    h = jnp.zeros((B, H), jnp.float32)
    for t in range(T):
        xp = xproj[t * B:(t + 1) * B, :]                          # (B, 3H)
        hp = jnp.dot(h, wh, preferred_element_type=jnp.float32) + bh
        r = jax.nn.sigmoid(xp[:, 0:H] + hp[:, 0:H])
        z = jax.nn.sigmoid(xp[:, H:2 * H] + hp[:, H:2 * H])
        # b_hn lives inside the r*(...) term -> it is part of hp's n-slice.
        n = jnp.tanh(xp[:, 2 * H:3 * H] + r * hp[:, 2 * H:3 * H])
        h = (1.0 - z) * n + z * h
        hs_ref[t * B:(t + 1) * B, :] = h

    # Deferred output projection: one (T*B,H)@(H,V) matmul + bias, one store.
    out_ref[...] = (jnp.dot(hs_ref[...], wout_ref[...],
                            preferred_element_type=jnp.float32)
                    + bout_ref[...])


def rnn_forward_pallas(tokens, params):
    """tokens: (B, T) int32.  Returns logits (B, T, V) float32."""
    emb = params["embedding"]                    # (V+1, E), padding row zeros
    B, T = tokens.shape
    H = params["wh"].shape[0]
    V = params["wout"].shape[1]
    vocab_rows = emb.shape[0]

    # Glue: flatten tokens to time-major rows (row = t*B + b), as a column.
    tok_flat = jnp.transpose(tokens, (1, 0)).reshape(T * B, 1).astype(jnp.int32)

    vmem = pl.BlockSpec(memory_space=pltpu.MemorySpace.VMEM)
    out_flat = pl.pallas_call(
        functools.partial(gru_fused_kernel, T=T, B=B, H=H,
                          VOCAB_ROWS=vocab_rows),
        out_shape=jax.ShapeDtypeStruct((T * B, V), jnp.float32),
        in_specs=[vmem] * 8,
        out_specs=vmem,
        scratch_shapes=[pltpu.VMEM((T * B, H), jnp.float32)],
    )(tok_flat, emb,
      params["wi"], params["wh"], params["bi"], params["bh"],
      params["wout"], params["bout"])

    return jnp.transpose(out_flat.reshape(T, B, V), (1, 0, 2))    # (B, T, V)


# ----------------------------------------------------------------------------
# Pure-JAX reference (lax.scan) for a correctness check (same fused layout).
# ----------------------------------------------------------------------------
def rnn_forward_ref(tokens, params):
    emb = params["embedding"]
    x = jnp.take(emb, tokens, axis=0)                             # (B, T, E)
    B, T, E = x.shape
    H = params["wh"].shape[0]

    def step(h, x_t):
        xp = x_t @ params["wi"] + params["bi"]
        hp = h @ params["wh"] + params["bh"]
        r = jax.nn.sigmoid(xp[:, :H] + hp[:, :H])
        z = jax.nn.sigmoid(xp[:, H:2 * H] + hp[:, H:2 * H])
        n = jnp.tanh(xp[:, 2 * H:] + r * hp[:, 2 * H:])
        h_new = (1.0 - z) * n + z * h
        return h_new, h_new

    h0 = jnp.zeros((B, H), jnp.float32)
    _, hs = jax.lax.scan(step, h0, jnp.transpose(x, (1, 0, 2)))   # (T, B, H)
    hs = jnp.transpose(hs, (1, 0, 2))                             # (B, T, H)
    return hs @ params["wout"] + params["bout"]


# ----------------------------------------------------------------------------
# Deterministic parameter init (PyTorch-style uniform(-1/sqrt(H), 1/sqrt(H))),
# with gate weights/biases pre-fused in PyTorch gate order [r | z | n].
# ----------------------------------------------------------------------------
def init_params(key, vocab_size, embed_size, hidden_size):
    V, E, H = vocab_size, embed_size, hidden_size
    ks = jax.random.split(key, 8)
    s = 1.0 / jnp.sqrt(jnp.float32(H))
    u = lambda k, shape: jax.random.uniform(k, shape, jnp.float32, -s, s)

    emb = jax.random.normal(ks[0], (V + 1, E), jnp.float32)
    emb = emb.at[V, :].set(0.0)          # padding_idx = vocab_size -> zero row

    return dict(
        embedding=emb,
        wi=u(ks[1], (E, 3 * H)),     # [W_ir | W_iz | W_in] (already transposed)
        wh=u(ks[2], (H, 3 * H)),     # [W_hr | W_hz | W_hn]
        bi=u(ks[3], (1, 3 * H)),     # [b_ir | b_iz | b_in]
        bh=u(ks[4], (1, 3 * H)),     # [b_hr | b_hz | b_hn]
        wout=u(ks[5], (H, V)),       # nn.Linear weight (transposed)
        bout=u(ks[6], (1, V)),
    )


# TODO(synk): time_encoding / target cross-entropy / return_feature branches of
# the module are disabled in this config and are not implemented here.

if __name__ == "__main__":
    vocab_size, embed_size, hidden_size = 16, 32, 32
    B, T = 2, 8

    key = jax.random.PRNGKey(0)
    k_params, k_tok = jax.random.split(key)
    params = init_params(k_params, vocab_size, embed_size, hidden_size)

    tokens = jax.random.randint(k_tok, (B, T), 0, vocab_size, dtype=jnp.int32)
    tokens = tokens.at[0, -1].set(vocab_size)   # exercise the padding-token row

    logits = jax.block_until_ready(rnn_forward_pallas(tokens, params))
    ref = jax.block_until_ready(rnn_forward_ref(tokens, params))

    assert logits.shape == (B, T, vocab_size)
    err = float(jnp.max(jnp.abs(logits - ref)))
    assert err < 1e-4, f"mismatch vs JAX reference: max abs err = {err}"

    print("KERNEL_OK")
</pallas_src>

<mosaic_0001>
module attributes {stable_mosaic.version = 11 : i64} {
  func.func @gru_fused_kernel(%arg0: memref<16x1xi32, #tpu.memory_space<vmem>>, %arg1: memref<17x32xf32, #tpu.memory_space<vmem>>, %arg2: memref<32x96xf32, #tpu.memory_space<vmem>>, %arg3: memref<32x96xf32, #tpu.memory_space<vmem>>, %arg4: memref<1x96xf32, #tpu.memory_space<vmem>>, %arg5: memref<1x96xf32, #tpu.memory_space<vmem>>, %arg6: memref<32x16xf32, #tpu.memory_space<vmem>>, %arg7: memref<1x16xf32, #tpu.memory_space<vmem>>, %arg8: memref<16x16xf32, #tpu.memory_space<vmem>>, %arg9: memref<16x32xf32, #tpu.memory_space<vmem>>) attributes {dimension_semantics = [], scalar_prefetch = 0 : i64, scratch_operands = 1 : i64, tpu.core_type = #tpu.core_type<tc>} {
    %0 = tpu.iota {dimensions = array<i32: 1>} : vector<16x17xi32>
    %c0 = arith.constant 0 : index
    %c0_0 = arith.constant 0 : index
    %1 = vector.load %arg0[%c0, %c0_0] : memref<16x1xi32, #tpu.memory_space<vmem>>, vector<16x1xi32>
    %2 = vector.broadcast %1 : vector<16x1xi32> to vector<16x17xi32>
    %3 = arith.cmpi eq, %2, %0 : vector<16x17xi32>
    %4 = arith.extui %3 : vector<16x17xi1> to vector<16x17xi32>
    %5 = arith.sitofp %4 : vector<16x17xi32> to vector<16x17xf32>
    %c0_1 = arith.constant 0 : index
    %c0_2 = arith.constant 0 : index
    %6 = vector.load %arg1[%c0_1, %c0_2] : memref<17x32xf32, #tpu.memory_space<vmem>>, vector<17x32xf32>
    %cst = arith.constant dense<0.000000e+00> : vector<16x32xf32>
    %7 = tpu.matmul %5, %6, %cst {dimension_numbers = #tpu.dot_dimension_numbers<[1], [0], [0], [1], [0, 0, 1, 1], [], []>} : vector<16x17xf32>, vector<17x32xf32>, vector<16x32xf32> -> vector<16x32xf32>
    %c0_3 = arith.constant 0 : index
    %c0_4 = arith.constant 0 : index
    %8 = vector.load %arg2[%c0_3, %c0_4] : memref<32x96xf32, #tpu.memory_space<vmem>>, vector<32x96xf32>
    %cst_5 = arith.constant dense<0.000000e+00> : vector<16x96xf32>
    %9 = tpu.matmul %7, %8, %cst_5 {dimension_numbers = #tpu.dot_dimension_numbers<[1], [0], [0], [1], [0, 0, 1, 1], [], []>} : vector<16x32xf32>, vector<32x96xf32>, vector<16x96xf32> -> vector<16x96xf32>
    %c0_6 = arith.constant 0 : index
    %c0_7 = arith.constant 0 : index
    %10 = vector.load %arg4[%c0_6, %c0_7] : memref<1x96xf32, #tpu.memory_space<vmem>>, vector<1x96xf32>
    %11 = vector.broadcast %10 : vector<1x96xf32> to vector<16x96xf32>
    %12 = arith.addf %9, %11 : vector<16x96xf32>
    %c0_8 = arith.constant 0 : index
    %c0_9 = arith.constant 0 : index
    %13 = vector.load %arg3[%c0_8, %c0_9] : memref<32x96xf32, #tpu.memory_space<vmem>>, vector<32x96xf32>
    %c0_10 = arith.constant 0 : index
    %c0_11 = arith.constant 0 : index
    %14 = vector.load %arg5[%c0_10, %c0_11] : memref<1x96xf32, #tpu.memory_space<vmem>>, vector<1x96xf32>
    %cst_12 = arith.constant 0.000000e+00 : f32
    %15 = vector.broadcast %cst_12 : f32 to vector<2x32xf32>
    %16 = vector.extract_strided_slice %12 {offsets = [0, 0], sizes = [2, 96], strides = [1, 1]} : vector<16x96xf32> to vector<2x96xf32>
    %cst_13 = arith.constant dense<0.000000e+00> : vector<2x96xf32>
    %17 = tpu.matmul %15, %13, %cst_13 {dimension_numbers = #tpu.dot_dimension_numbers<[1], [0], [0], [1], [0, 0, 1, 1], [], []>} : vector<2x32xf32>, vector<32x96xf32>, vector<2x96xf32> -> vector<2x96xf32>
    %18 = vector.broadcast %14 : vector<1x96xf32> to vector<2x96xf32>
    %19 = arith.addf %17, %18 : vector<2x96xf32>
    %20 = vector.extract_strided_slice %16 {offsets = [0, 0], sizes = [2, 32], strides = [1, 1]} : vector<2x96xf32> to vector<2x32xf32>
    %21 = vector.extract_strided_slice %19 {offsets = [0, 0], sizes = [2, 32], strides = [1, 1]} : vector<2x96xf32> to vector<2x32xf32>
    %22 = arith.addf %20, %21 : vector<2x32xf32>
    %23 = arith.negf %22 : vector<2x32xf32>
    %24 = math.exp %23 : vector<2x32xf32>
    %cst_14 = arith.constant 1.000000e+00 : f32
    %25 = vector.broadcast %cst_14 : f32 to vector<2x32xf32>
    %26 = arith.addf %25, %24 : vector<2x32xf32>
    %27 = arith.divf %25, %26 : vector<2x32xf32>
    %28 = vector.extract_strided_slice %16 {offsets = [0, 32], sizes = [2, 32], strides = [1, 1]} : vector<2x96xf32> to vector<2x32xf32>
    %29 = vector.extract_strided_slice %19 {offsets = [0, 32], sizes = [2, 32], strides = [1, 1]} : vector<2x96xf32> to vector<2x32xf32>
    %30 = arith.addf %28, %29 : vector<2x32xf32>
    %31 = arith.negf %30 : vector<2x32xf32>
    %32 = math.exp %31 : vector<2x32xf32>
    %cst_15 = arith.constant 1.000000e+00 : f32
    %33 = vector.broadcast %cst_15 : f32 to vector<2x32xf32>
    %34 = arith.addf %33, %32 : vector<2x32xf32>
    %35 = arith.divf %33, %34 : vector<2x32xf32>
    %36 = vector.extract_strided_slice %16 {offsets = [0, 64], sizes = [2, 32], strides = [1, 1]} : vector<2x96xf32> to vector<2x32xf32>
    %37 = vector.extract_strided_slice %19 {offsets = [0, 64], sizes = [2, 32], strides = [1, 1]} : vector<2x96xf32> to vector<2x32xf32>
    %38 = arith.mulf %27, %37 : vector<2x32xf32>
    %39 = arith.addf %36, %38 : vector<2x32xf32>
    %40 = math.tanh %39 : vector<2x32xf32>
    %cst_16 = arith.constant 1.000000e+00 : f32
    %41 = vector.broadcast %cst_16 : f32 to vector<2x32xf32>
    %42 = arith.subf %41, %35 : vector<2x32xf32>
    %43 = arith.mulf %42, %40 : vector<2x32xf32>
    %44 = arith.mulf %35, %15 : vector<2x32xf32>
    %45 = arith.addf %43, %44 : vector<2x32xf32>
    %c0_17 = arith.constant 0 : index
    %c0_18 = arith.constant 0 : index
    %46 = vector.load %arg9[%c0_17, %c0_18] : memref<16x32xf32, #tpu.memory_space<vmem>>, vector<2x32xf32>
    tpu.vector_store %arg9[%c0_17, %c0_18], %45 {strides = array<i32>} : memref<16x32xf32, #tpu.memory_space<vmem>>, vector<2x32xf32>,
    %47 = vector.extract_strided_slice %12 {offsets = [2, 0], sizes = [2, 96], strides = [1, 1]} : vector<16x96xf32> to vector<2x96xf32>
    %cst_19 = arith.constant dense<0.000000e+00> : vector<2x96xf32>
    %48 = tpu.matmul %45, %13, %cst_19 {dimension_numbers = #tpu.dot_dimension_numbers<[1], [0], [0], [1], [0, 0, 1, 1], [], []>} : vector<2x32xf32>, vector<32x96xf32>, vector<2x96xf32> -> vector<2x96xf32>
    %49 = vector.broadcast %14 : vector<1x96xf32> to vector<2x96xf32>
    %50 = arith.addf %48, %49 : vector<2x96xf32>
    %51 = vector.extract_strided_slice %47 {offsets = [0, 0], sizes = [2, 32], strides = [1, 1]} : vector<2x96xf32> to vector<2x32xf32>
    %52 = vector.extract_strided_slice %50 {offsets = [0, 0], sizes = [2, 32], strides = [1, 1]} : vector<2x96xf32> to vector<2x32xf32>
    %53 = arith.addf %51, %52 : vector<2x32xf32>
    %54 = arith.negf %53 : vector<2x32xf32>
    %55 = math.exp %54 : vector<2x32xf32>
    %cst_20 = arith.constant 1.000000e+00 : f32
    %56 = vector.broadcast %cst_20 : f32 to vector<2x32xf32>
    %57 = arith.addf %56, %55 : vector<2x32xf32>
    %58 = arith.divf %56, %57 : vector<2x32xf32>
    %59 = vector.extract_strided_slice %47 {offsets = [0, 32], sizes = [2, 32], strides = [1, 1]} : vector<2x96xf32> to vector<2x32xf32>
    %60 = vector.extract_strided_slice %50 {offsets = [0, 32], sizes = [2, 32], strides = [1, 1]} : vector<2x96xf32> to vector<2x32xf32>
    %61 = arith.addf %59, %60 : vector<2x32xf32>
    %62 = arith.negf %61 : vector<2x32xf32>
    %63 = math.exp %62 : vector<2x32xf32>
    %cst_21 = arith.constant 1.000000e+00 : f32
    %64 = vector.broadcast %cst_21 : f32 to vector<2x32xf32>
    %65 = arith.addf %64, %63 : vector<2x32xf32>
    %66 = arith.divf %64, %65 : vector<2x32xf32>
    %67 = vector.extract_strided_slice %47 {offsets = [0, 64], sizes = [2, 32], strides = [1, 1]} : vector<2x96xf32> to vector<2x32xf32>
    %68 = vector.extract_strided_slice %50 {offsets = [0, 64], sizes = [2, 32], strides = [1, 1]} : vector<2x96xf32> to vector<2x32xf32>
    %69 = arith.mulf %58, %68 : vector<2x32xf32>
    %70 = arith.addf %67, %69 : vector<2x32xf32>
    %71 = math.tanh %70 : vector<2x32xf32>
    %cst_22 = arith.constant 1.000000e+00 : f32
    %72 = vector.broadcast %cst_22 : f32 to vector<2x32xf32>
    %73 = arith.subf %72, %66 : vector<2x32xf32>
    %74 = arith.mulf %73, %71 : vector<2x32xf32>
    %75 = arith.mulf %66, %45 : vector<2x32xf32>
    %76 = arith.addf %74, %75 : vector<2x32xf32>
    %c2 = arith.constant 2 : index
    %c0_23 = arith.constant 0 : index
    %77 = vector.load %arg9[%c2, %c0_23] : memref<16x32xf32, #tpu.memory_space<vmem>>, vector<2x32xf32>
    tpu.vector_store %arg9[%c2, %c0_23], %76 {strides = array<i32>} : memref<16x32xf32, #tpu.memory_space<vmem>>, vector<2x32xf32>,
    %78 = vector.extract_strided_slice %12 {offsets = [4, 0], sizes = [2, 96], strides = [1, 1]} : vector<16x96xf32> to vector<2x96xf32>
    %cst_24 = arith.constant dense<0.000000e+00> : vector<2x96xf32>
    %79 = tpu.matmul %76, %13, %cst_24 {dimension_numbers = #tpu.dot_dimension_numbers<[1], [0], [0], [1], [0, 0, 1, 1], [], []>} : vector<2x32xf32>, vector<32x96xf32>, vector<2x96xf32> -> vector<2x96xf32>
    %80 = vector.broadcast %14 : vector<1x96xf32> to vector<2x96xf32>
    %81 = arith.addf %79, %80 : vector<2x96xf32>
    %82 = vector.extract_strided_slice %78 {offsets = [0, 0], sizes = [2, 32], strides = [1, 1]} : vector<2x96xf32> to vector<2x32xf32>
    %83 = vector.extract_strided_slice %81 {offsets = [0, 0], sizes = [2, 32], strides = [1, 1]} : vector<2x96xf32> to vector<2x32xf32>
    %84 = arith.addf %82, %83 : vector<2x32xf32>
    %85 = arith.negf %84 : vector<2x32xf32>
    %86 = math.exp %85 : vector<2x32xf32>
    %cst_25 = arith.constant 1.000000e+00 : f32
    %87 = vector.broadcast %cst_25 : f32 to vector<2x32xf32>
    %88 = arith.addf %87, %86 : vector<2x32xf32>
    %89 = arith.divf %87, %88 : vector<2x32xf32>
    %90 = vector.extract_strided_slice %78 {offsets = [0, 32], sizes = [2, 32], strides = [1, 1]} : vector<2x96xf32> to vector<2x32xf32>
    %91 = vector.extract_strided_slice %81 {offsets = [0, 32], sizes = [2, 32], strides = [1, 1]} : vector<2x96xf32> to vector<2x32xf32>
    %92 = arith.addf %90, %91 : vector<2x32xf32>
    %93 = arith.negf %92 : vector<2x32xf32>
    %94 = math.exp %93 : vector<2x32xf32>
    %cst_26 = arith.constant 1.000000e+00 : f32
    %95 = vector.broadcast %cst_26 : f32 to vector<2x32xf32>
    %96 = arith.addf %95, %94 : vector<2x32xf32>
    %97 = arith.divf %95, %96 : vector<2x32xf32>
    %98 = vector.extract_strided_slice %78 {offsets = [0, 64], sizes = [2, 32], strides = [1, 1]} : vector<2x96xf32> to vector<2x32xf32>
    %99 = vector.extract_strided_slice %81 {offsets = [0, 64], sizes = [2, 32], strides = [1, 1]} : vector<2x96xf32> to vector<2x32xf32>
    %100 = arith.mulf %89, %99 : vector<2x32xf32>
    %101 = arith.addf %98, %100 : vector<2x32xf32>
    %102 = math.tanh %101 : vector<2x32xf32>
    %cst_27 = arith.constant 1.000000e+00 : f32
    %103 = vector.broadcast %cst_27 : f32 to vector<2x32xf32>
    %104 = arith.subf %103, %97 : vector<2x32xf32>
    %105 = arith.mulf %104, %102 : vector<2x32xf32>
    %106 = arith.mulf %97, %76 : vector<2x32xf32>
    %107 = arith.addf %105, %106 : vector<2x32xf32>
    %c4 = arith.constant 4 : index
    %c0_28 = arith.constant 0 : index
    %108 = vector.load %arg9[%c4, %c0_28] : memref<16x32xf32, #tpu.memory_space<vmem>>, vector<2x32xf32>
    tpu.vector_store %arg9[%c4, %c0_28], %107 {strides = array<i32>} : memref<16x32xf32, #tpu.memory_space<vmem>>, vector<2x32xf32>,
    %109 = vector.extract_strided_slice %12 {offsets = [6, 0], sizes = [2, 96], strides = [1, 1]} : vector<16x96xf32> to vector<2x96xf32>
    %cst_29 = arith.constant dense<0.000000e+00> : vector<2x96xf32>
    %110 = tpu.matmul %107, %13, %cst_29 {dimension_numbers = #tpu.dot_dimension_numbers<[1], [0], [0], [1], [0, 0, 1, 1], [], []>} : vector<2x32xf32>, vector<32x96xf32>, vector<2x96xf32> -> vector<2x96xf32>
    %111 = vector.broadcast %14 : vector<1x96xf32> to vector<2x96xf32>
    %112 = arith.addf %110, %111 : vector<2x96xf32>
    %113 = vector.extract_strided_slice %109 {offsets = [0, 0], sizes = [2, 32], strides = [1, 1]} : vector<2x96xf32> to vector<2x32xf32>
    %114 = vector.extract_strided_slice %112 {offsets = [0, 0], sizes = [2, 32], strides = [1, 1]} : vector<2x96xf32> to vector<2x32xf32>
    %115 = arith.addf %113, %114 : vector<2x32xf32>
    %116 = arith.negf %115 : vector<2x32xf32>
    %117 = math.exp %116 : vector<2x32xf32>
    %cst_30 = arith.constant 1.000000e+00 : f32
    %118 = vector.broadcast %cst_30 : f32 to vector<2x32xf32>
    %119 = arith.addf %118, %117 : vector<2x32xf32>
    %120 = arith.divf %118, %119 : vector<2x32xf32>
    %121 = vector.extract_strided_slice %109 {offsets = [0, 32], sizes = [2, 32], strides = [1, 1]} : vector<2x96xf32> to vector<2x32xf32>
    %122 = vector.extract_strided_slice %112 {offsets = [0, 32], sizes = [2, 32], strides = [1, 1]} : vector<2x96xf32> to vector<2x32xf32>
    %123 = arith.addf %121, %122 : vector<2x32xf32>
    %124 = arith.negf %123 : vector<2x32xf32>
    %125 = math.exp %124 : vector<2x32xf32>
    %cst_31 = arith.constant 1.000000e+00 : f32
    %126 = vector.broadcast %cst_31 : f32 to vector<2x32xf32>
    %127 = arith.addf %126, %125 : vector<2x32xf32>
    %128 = arith.divf %126, %127 : vector<2x32xf32>
    %129 = vector.extract_strided_slice %109 {offsets = [0, 64], sizes = [2, 32], strides = [1, 1]} : vector<2x96xf32> to vector<2x32xf32>
    %130 = vector.extract_strided_slice %112 {offsets = [0, 64], sizes = [2, 32], strides = [1, 1]} : vector<2x96xf32> to vector<2x32xf32>
    %131 = arith.mulf %120, %130 : vector<2x32xf32>
    %132 = arith.addf %129, %131 : vector<2x32xf32>
    %133 = math.tanh %132 : vector<2x32xf32>
    %cst_32 = arith.constant 1.000000e+00 : f32
    %134 = vector.broadcast %cst_32 : f32 to vector<2x32xf32>
    %135 = arith.subf %134, %128 : vector<2x32xf32>
    %136 = arith.mulf %135, %133 : vector<2x32xf32>
    %137 = arith.mulf %128, %107 : vector<2x32xf32>
    %138 = arith.addf %136, %137 : vector<2x32xf32>
    %c6 = arith.constant 6 : index
    %c0_33 = arith.constant 0 : index
    %139 = vector.load %arg9[%c6, %c0_33] : memref<16x32xf32, #tpu.memory_space<vmem>>, vector<2x32xf32>
    tpu.vector_store %arg9[%c6, %c0_33], %138 {strides = array<i32>} : memref<16x32xf32, #tpu.memory_space<vmem>>, vector<2x32xf32>,
    %140 = vector.extract_strided_slice %12 {offsets = [8, 0], sizes = [2, 96], strides = [1, 1]} : vector<16x96xf32> to vector<2x96xf32>
    %cst_34 = arith.constant dense<0.000000e+00> : vector<2x96xf32>
    %141 = tpu.matmul %138, %13, %cst_34 {dimension_numbers = #tpu.dot_dimension_numbers<[1], [0], [0], [1], [0, 0, 1, 1], [], []>} : vector<2x32xf32>, vector<32x96xf32>, vector<2x96xf32> -> vector<2x96xf32>
    %142 = vector.broadcast %14 : vector<1x96xf32> to vector<2x96xf32>
    %143 = arith.addf %141, %142 : vector<2x96xf32>
    %144 = vector.extract_strided_slice %140 {offsets = [0, 0], sizes = [2, 32], strides = [1, 1]} : vector<2x96xf32> to vector<2x32xf32>
    %145 = vector.extract_strided_slice %143 {offsets = [0, 0], sizes = [2, 32], strides = [1, 1]} : vector<2x96xf32> to vector<2x32xf32>
    %146 = arith.addf %144, %145 : vector<2x32xf32>
    %147 = arith.negf %146 : vector<2x32xf32>
    %148 = math.exp %147 : vector<2x32xf32>
    %cst_35 = arith.constant 1.000000e+00 : f32
    %149 = vector.broadcast %cst_35 : f32 to vector<2x32xf32>
    %150 = arith.addf %149, %148 : vector<2x32xf32>
    %151 = arith.divf %149, %150 : vector<2x32xf32>
    %152 = vector.extract_strided_slice %140 {offsets = [0, 32], sizes = [2, 32], strides = [1, 1]} : vector<2x96xf32> to vector<2x32xf32>
    %153 = vector.extract_strided_slice %143 {offsets = [0, 32], sizes = [2, 32], strides = [1, 1]} : vector<2x96xf32> to vector<2x32xf32>
    %154 = arith.addf %152, %153 : vector<2x32xf32>
    %155 = arith.negf %154 : vector<2x32xf32>
    %156 = math.exp %155 : vector<2x32xf32>
    %cst_36 = arith.constant 1.000000e+00 : f32
    %157 = vector.broadcast %cst_36 : f32 to vector<2x32xf32>
    %158 = arith.addf %157, %156 : vector<2x32xf32>
    %159 = arith.divf %157, %158 : vector<2x32xf32>
    %160 = vector.extract_strided_slice %140 {offsets = [0, 64], sizes = [2, 32], strides = [1, 1]} : vector<2x96xf32> to vector<2x32xf32>
    %161 = vector.extract_strided_slice %143 {offsets = [0, 64], sizes = [2, 32], strides = [1, 1]} : vector<2x96xf32> to vector<2x32xf32>
    %162 = arith.mulf %151, %161 : vector<2x32xf32>
    %163 = arith.addf %160, %162 : vector<2x32xf32>
    %164 = math.tanh %163 : vector<2x32xf32>
    %cst_37 = arith.constant 1.000000e+00 : f32
    %165 = vector.broadcast %cst_37 : f32 to vector<2x32xf32>
    %166 = arith.subf %165, %159 : vector<2x32xf32>
    %167 = arith.mulf %166, %164 : vector<2x32xf32>
    %168 = arith.mulf %159, %138 : vector<2x32xf32>
    %169 = arith.addf %167, %168 : vector<2x32xf32>
    %c8 = arith.constant 8 : index
    %c0_38 = arith.constant 0 : index
    %170 = vector.load %arg9[%c8, %c0_38] : memref<16x32xf32, #tpu.memory_space<vmem>>, vector<2x32xf32>
    tpu.vector_store %arg9[%c8, %c0_38], %169 {strides = array<i32>} : memref<16x32xf32, #tpu.memory_space<vmem>>, vector<2x32xf32>,
    %171 = vector.extract_strided_slice %12 {offsets = [10, 0], sizes = [2, 96], strides = [1, 1]} : vector<16x96xf32> to vector<2x96xf32>
    %cst_39 = arith.constant dense<0.000000e+00> : vector<2x96xf32>
    %172 = tpu.matmul %169, %13, %cst_39 {dimension_numbers = #tpu.dot_dimension_numbers<[1], [0], [0], [1], [0, 0, 1, 1], [], []>} : vector<2x32xf32>, vector<32x96xf32>, vector<2x96xf32> -> vector<2x96xf32>
    %173 = vector.broadcast %14 : vector<1x96xf32> to vector<2x96xf32>
    %174 = arith.addf %172, %173 : vector<2x96xf32>
    %175 = vector.extract_strided_slice %171 {offsets = [0, 0], sizes = [2, 32], strides = [1, 1]} : vector<2x96xf32> to vector<2x32xf32>
    %176 = vector.extract_strided_slice %174 {offsets = [0, 0], sizes = [2, 32], strides = [1, 1]} : vector<2x96xf32> to vector<2x32xf32>
    %177 = arith.addf %175, %176 : vector<2x32xf32>
    %178 = arith.negf %177 : vector<2x32xf32>
    %179 = math.exp %178 : vector<2x32xf32>
    %cst_40 = arith.constant 1.000000e+00 : f32
    %180 = vector.broadcast %cst_40 : f32 to vector<2x32xf32>
    %181 = arith.addf %180, %179 : vector<2x32xf32>
    %182 = arith.divf %180, %181 : vector<2x32xf32>
    %183 = vector.extract_strided_slice %171 {offsets = [0, 32], sizes = [2, 32], strides = [1, 1]} : vector<2x96xf32> to vector<2x32xf32>
    %184 = vector.extract_strided_slice %174 {offsets = [0, 32], sizes = [2, 32], strides = [1, 1]} : vector<2x96xf32> to vector<2x32xf32>
    %185 = arith.addf %183, %184 : vector<2x32xf32>
    %186 = arith.negf %185 : vector<2x32xf32>
    %187 = math.exp %186 : vector<2x32xf32>
    %cst_41 = arith.constant 1.000000e+00 : f32
    %188 = vector.broadcast %cst_41 : f32 to vector<2x32xf32>
    %189 = arith.addf %188, %187 : vector<2x32xf32>
    %190 = arith.divf %188, %189 : vector<2x32xf32>
    %191 = vector.extract_strided_slice %171 {offsets = [0, 64], sizes = [2, 32], strides = [1, 1]} : vector<2x96xf32> to vector<2x32xf32>
    %192 = vector.extract_strided_slice %174 {offsets = [0, 64], sizes = [2, 32], strides = [1, 1]} : vector<2x96xf32> to vector<2x32xf32>
    %193 = arith.mulf %182, %192 : vector<2x32xf32>
    %194 = arith.addf %191, %193 : vector<2x32xf32>
    %195 = math.tanh %194 : vector<2x32xf32>
    %cst_42 = arith.constant 1.000000e+00 : f32
    %196 = vector.broadcast %cst_42 : f32 to vector<2x32xf32>
    %197 = arith.subf %196, %190 : vector<2x32xf32>
    %198 = arith.mulf %197, %195 : vector<2x32xf32>
    %199 = arith.mulf %190, %169 : vector<2x32xf32>
    %200 = arith.addf %198, %199 : vector<2x32xf32>
    %c10 = arith.constant 10 : index
    %c0_43 = arith.constant 0 : index
    %201 = vector.load %arg9[%c10, %c0_43] : memref<16x32xf32, #tpu.memory_space<vmem>>, vector<2x32xf32>
    tpu.vector_store %arg9[%c10, %c0_43], %200 {strides = array<i32>} : memref<16x32xf32, #tpu.memory_space<vmem>>, vector<2x32xf32>,
    %202 = vector.extract_strided_slice %12 {offsets = [12, 0], sizes = [2, 96], strides = [1, 1]} : vector<16x96xf32> to vector<2x96xf32>
    %cst_44 = arith.constant dense<0.000000e+00> : vector<2x96xf32>
    %203 = tpu.matmul %200, %13, %cst_44 {dimension_numbers = #tpu.dot_dimension_numbers<[1], [0], [0], [1], [0, 0, 1, 1], [], []>} : vector<2x32xf32>, vector<32x96xf32>, vector<2x96xf32> -> vector<2x96xf32>
    %204 = vector.broadcast %14 : vector<1x96xf32> to vector<2x96xf32>
    %205 = arith.addf %203, %204 : vector<2x96xf32>
    %206 = vector.extract_strided_slice %202 {offsets = [0, 0], sizes = [2, 32], strides = [1, 1]} : vector<2x96xf32> to vector<2x32xf32>
    %207 = vector.extract_strided_slice %205 {offsets = [0, 0], sizes = [2, 32], strides = [1, 1]} : vector<2x96xf32> to vector<2x32xf32>
    %208 = arith.addf %206, %207 : vector<2x32xf32>
    %209 = arith.negf %208 : vector<2x32xf32>
    %210 = math.exp %209 : vector<2x32xf32>
    %cst_45 = arith.constant 1.000000e+00 : f32
    %211 = vector.broadcast %cst_45 : f32 to vector<2x32xf32>
    %212 = arith.addf %211, %210 : vector<2x32xf32>
    %213 = arith.divf %211, %212 : vector<2x32xf32>
    %214 = vector.extract_strided_slice %202 {offsets = [0, 32], sizes = [2, 32], strides = [1, 1]} : vector<2x96xf32> to vector<2x32xf32>
    %215 = vector.extract_strided_slice %205 {offsets = [0, 32], sizes = [2, 32], strides = [1, 1]} : vector<2x96xf32> to vector<2x32xf32>
    %216 = arith.addf %214, %215 : vector<2x32xf32>
    %217 = arith.negf %216 : vector<2x32xf32>
    %218 = math.exp %217 : vector<2x32xf32>
    %cst_46 = arith.constant 1.000000e+00 : f32
    %219 = vector.broadcast %cst_46 : f32 to vector<2x32xf32>
    %220 = arith.addf %219, %218 : vector<2x32xf32>
    %221 = arith.divf %219, %220 : vector<2x32xf32>
    %222 = vector.extract_strided_slice %202 {offsets = [0, 64], sizes = [2, 32], strides = [1, 1]} : vector<2x96xf32> to vector<2x32xf32>
    %223 = vector.extract_strided_slice %205 {offsets = [0, 64], sizes = [2, 32], strides = [1, 1]} : vector<2x96xf32> to vector<2x32xf32>
    %224 = arith.mulf %213, %223 : vector<2x32xf32>
    %225 = arith.addf %222, %224 : vector<2x32xf32>
    %226 = math.tanh %225 : vector<2x32xf32>
    %cst_47 = arith.constant 1.000000e+00 : f32
    %227 = vector.broadcast %cst_47 : f32 to vector<2x32xf32>
    %228 = arith.subf %227, %221 : vector<2x32xf32>
    %229 = arith.mulf %228, %226 : vector<2x32xf32>
    %230 = arith.mulf %221, %200 : vector<2x32xf32>
    %231 = arith.addf %229, %230 : vector<2x32xf32>
    %c12 = arith.constant 12 : index
    %c0_48 = arith.constant 0 : index
    %232 = vector.load %arg9[%c12, %c0_48] : memref<16x32xf32, #tpu.memory_space<vmem>>, vector<2x32xf32>
    tpu.vector_store %arg9[%c12, %c0_48], %231 {strides = array<i32>} : memref<16x32xf32, #tpu.memory_space<vmem>>, vector<2x32xf32>,
    %233 = vector.extract_strided_slice %12 {offsets = [14, 0], sizes = [2, 96], strides = [1, 1]} : vector<16x96xf32> to vector<2x96xf32>
    %cst_49 = arith.constant dense<0.000000e+00> : vector<2x96xf32>
    %234 = tpu.matmul %231, %13, %cst_49 {dimension_numbers = #tpu.dot_dimension_numbers<[1], [0], [0], [1], [0, 0, 1, 1], [], []>} : vector<2x32xf32>, vector<32x96xf32>, vector<2x96xf32> -> vector<2x96xf32>
    %235 = vector.broadcast %14 : vector<1x96xf32> to vector<2x96xf32>
    %236 = arith.addf %234, %235 : vector<2x96xf32>
    %237 = vector.extract_strided_slice %233 {offsets = [0, 0], sizes = [2, 32], strides = [1, 1]} : vector<2x96xf32> to vector<2x32xf32>
    %238 = vector.extract_strided_slice %236 {offsets = [0, 0], sizes = [2, 32], strides = [1, 1]} : vector<2x96xf32> to vector<2x32xf32>
    %239 = arith.addf %237, %238 : vector<2x32xf32>
    %240 = arith.negf %239 : vector<2x32xf32>
    %241 = math.exp %240 : vector<2x32xf32>
    %cst_50 = arith.constant 1.000000e+00 : f32
    %242 = vector.broadcast %cst_50 : f32 to vector<2x32xf32>
    %243 = arith.addf %242, %241 : vector<2x32xf32>
    %244 = arith.divf %242, %243 : vector<2x32xf32>
    %245 = vector.extract_strided_slice %233 {offsets = [0, 32], sizes = [2, 32], strides = [1, 1]} : vector<2x96xf32> to vector<2x32xf32>
    %246 = vector.extract_strided_slice %236 {offsets = [0, 32], sizes = [2, 32], strides = [1, 1]} : vector<2x96xf32> to vector<2x32xf32>
    %247 = arith.addf %245, %246 : vector<2x32xf32>
    %248 = arith.negf %247 : vector<2x32xf32>
    %249 = math.exp %248 : vector<2x32xf32>
    %cst_51 = arith.constant 1.000000e+00 : f32
    %250 = vector.broadcast %cst_51 : f32 to vector<2x32xf32>
    %251 = arith.addf %250, %249 : vector<2x32xf32>
    %252 = arith.divf %250, %251 : vector<2x32xf32>
    %253 = vector.extract_strided_slice %233 {offsets = [0, 64], sizes = [2, 32], strides = [1, 1]} : vector<2x96xf32> to vector<2x32xf32>
    %254 = vector.extract_strided_slice %236 {offsets = [0, 64], sizes = [2, 32], strides = [1, 1]} : vector<2x96xf32> to vector<2x32xf32>
    %255 = arith.mulf %244, %254 : vector<2x32xf32>
    %256 = arith.addf %253, %255 : vector<2x32xf32>
    %257 = math.tanh %256 : vector<2x32xf32>
    %cst_52 = arith.constant 1.000000e+00 : f32
    %258 = vector.broadcast %cst_52 : f32 to vector<2x32xf32>
    %259 = arith.subf %258, %252 : vector<2x32xf32>
    %260 = arith.mulf %259, %257 : vector<2x32xf32>
    %261 = arith.mulf %252, %231 : vector<2x32xf32>
    %262 = arith.addf %260, %261 : vector<2x32xf32>
    %c14 = arith.constant 14 : index
    %c0_53 = arith.constant 0 : index
    %263 = vector.load %arg9[%c14, %c0_53] : memref<16x32xf32, #tpu.memory_space<vmem>>, vector<2x32xf32>
    tpu.vector_store %arg9[%c14, %c0_53], %262 {strides = array<i32>} : memref<16x32xf32, #tpu.memory_space<vmem>>, vector<2x32xf32>,
    %c0_54 = arith.constant 0 : index
    %c0_55 = arith.constant 0 : index
    %264 = vector.load %arg9[%c0_54, %c0_55] : memref<16x32xf32, #tpu.memory_space<vmem>>, vector<16x32xf32>
    %c0_56 = arith.constant 0 : index
    %c0_57 = arith.constant 0 : index
    %265 = vector.load %arg6[%c0_56, %c0_57] : memref<32x16xf32, #tpu.memory_space<vmem>>, vector<32x16xf32>
    %cst_58 = arith.constant dense<0.000000e+00> : vector<16x16xf32>
    %266 = tpu.matmul %264, %265, %cst_58 {dimension_numbers = #tpu.dot_dimension_numbers<[1], [0], [0], [1], [0, 0, 1, 1], [], []>} : vector<16x32xf32>, vector<32x16xf32>, vector<16x16xf32> -> vector<16x16xf32>
    %c0_59 = arith.constant 0 : index
    %c0_60 = arith.constant 0 : index
    %267 = vector.load %arg7[%c0_59, %c0_60] : memref<1x16xf32, #tpu.memory_space<vmem>>, vector<1x16xf32>
    %268 = vector.broadcast %267 : vector<1x16xf32> to vector<16x16xf32>
    %269 = arith.addf %266, %268 : vector<16x16xf32>
    %c0_61 = arith.constant 0 : index
    %c0_62 = arith.constant 0 : index
    %270 = vector.load %arg8[%c0_61, %c0_62] : memref<16x16xf32, #tpu.memory_space<vmem>>, vector<16x16xf32>
    tpu.vector_store %arg8[%c0_61, %c0_62], %269 {strides = array<i32>} : memref<16x16xf32, #tpu.memory_space<vmem>>, vector<16x16xf32>,
    return
  }
}

</mosaic_0001>

<bundles_post_ra>
// kernel: tpu_custom_call.1
= control target key start
LH: loop header
LB: loop body
LE: loop exit
PB: predicated region body
PF: predicated region fallthrough
CT: control target
= control target key end

     0   :  { %13 = vsyncpa [#allocation4], 0  ;;  %s1216_s0 = inlined_call_operand.vmem [shape: s32[16,1], index: 0, kind: input, shape index: {}]   ;;  %s1217_s1 = inlined_call_operand.hbm [shape: f32[17,32], index: 1, kind: input, shape index: {}]   ;;  %s1218_s2 = inlined_call_operand.vmem [shape: f32[32,96], index: 2, kind: input, shape index: {}]   ;;  %s1219_s3 = inlined_call_operand.hbm [shape: f32[32,96], index: 3, kind: input, shape index: {}]   ;;  %s1220_s4 = inlined_call_operand.vmem [shape: f32[1,96], index: 4, kind: input, shape index: {}]   ;;  %s1221_s5 = inlined_call_operand.vmem [shape: f32[1,96], index: 5, kind: input, shape index: {}]   ;;  %s1222_s6 = inlined_call_operand.vmem [shape: f32[32,16], index: 6, kind: input, shape index: {}]   ;;  %s1223_s7 = inlined_call_operand.vmem [shape: f32[1,16], index: 7, kind: input, shape index: {}]   ;;  %s1224_s8 = inlined_call_operand.hbm [shape: f32[16,16], index: 8, kind: output, shape index: {}]  }
   0x1   :  { %14 = vsyncpa [#allocation7], 0 }
   0x2   :  { %15 = vsyncpa [#allocation5], 0  ;;  %s22_s29 = sshll.u32 %s1217_s1, 4  ;;  %s962_s30 = smov [#allocation3]   ;;  %s23_s29 = int_to_ptr.hbm [resolvable:$true] %s22_s29 }
   0x3   :  { %s24_s9 = sshll.u32 %s962_s30, 4  ;;  %s37_s12 = sshll.u32 %s1219_s3, 4  ;;  %s25_s9 = int_to_ptr.vmem [resolvable:$true] %s24_s9  ;;  %s38_s12 = int_to_ptr.hbm [resolvable:$true] %s37_s12 }
   0x4   :  { %s963_s13 = smov 128   ;;  %s964_s14 = smov 8  }
   0x5   :  { %30 = dma.hbm_to_vmem [thread:$0]  %s23_s29, 384, %s25_s9, [#allocation4], %s963_s13, %s963_s13, %s964_s14  }
   0x6   :  { %s965_s15 = smov [#allocation6]  }
   0x7   :  { %s39_s16 = sshll.u32 %s965_s15, 4  ;;  %s40_s16 = int_to_ptr.vmem [resolvable:$true] %s39_s16 }
   0x8   :  { %45 = dma.hbm_to_vmem [thread:$0]  %s38_s12, 512, %s40_s16, [#allocation7], %s963_s13, %s963_s13, %s964_s14  }
   0x9   :  { %956 = dma.done.wait [#allocation4], 384  }
   0xa   :  { %957 = vsyncadd [#allocation4], 4294966912 }
   0xb   :  { %958 = dma.done.wait [#allocation7], 512  }
   0xc   :  { %959 = vsyncadd [#allocation7], 4294966784  ;;  %v966_v0 = vmov 0   ;;  %vm88_vm0 = vcmask 1040384   ;;  %v64_v1 = vld [vmem:[%s1216_s0] sm:$0xff]  ;;  %v79_v3 = vld [vmem:[#allocation3 + $0x8] sm:$0xff]  ;;  %v62_v15 = vlaneseq }
   0xd   :  { %832 = vset.pattern.permute.xlu0 %v966_v0  ;;  %v80_v2 = vld [vmem:[#allocation3 + $0x10] sm:$0x1]  ;;  %v65_v4 = vld [vmem:[%s1216_s0 + $0x8] sm:$0xff]  ;;  %v78_v5 = vld [vmem:[#allocation3] sm:$0xff]  ;;  %v967_v14 = vmov 0.0   ;;  %vm81_vm1 = vcmask 138240  }
   0xe   :  { %67 = vperm.xlu0 %832, %v64_v1   ;;  %798 = vmatpush.msk.msra.mxu0 %vm88_vm0, %v80_v2  ;;  %v1034_v6 = vld [vmem:[#allocation6 + $0x18] sm:$0xff]  ;;  %v1036_v7 = vld [vmem:[#allocation6 + $0x10] sm:$0xff]  ;;  %v117_v9 = vld [vmem:[%s1218_s2 + $0x10] sm:$0xff]  ;;  %v63_v16 = vand.u32 127, %v62_v15  ;;  %s968_s27 = smov 64   ;;  %vm123_vm4 = vcmask 261120  }
   0xf   :  { %820 = vmatpush.msk.msra.mxu1 %vm88_vm0, %v80_v2  ;;  %176 = vmatpush.msra.mxu2 %v1034_v6  ;;  %v118_v8 = vld [vmem:[%s1218_s2 + $0x18] sm:$0xff]  ;;  %v1046_v10 = vld [vmem:[#allocation6 + $0x8] sm:$0xff]  ;;  %v116_v11 = vld [vmem:[%s1218_s2 + $0x8] sm:$0xff]  ;;  %vm227_vm9 = vcmask 254976   ;;  %s970_s3 = smov [#allocation8]   ;;  %s782_s20 = sshll.u32 %s1224_s8, 4  ;;  %s783_s20 = int_to_ptr.hbm [resolvable:$true] %s782_s20 }
  0x10   :  { %106 = vmatpush.msra.mxu0 %v79_v3  ;;  %243 = vmatpush.msra.mxu3 %v1034_v6  ;;  %v1054_v12 = vld [vmem:[#allocation6] sm:$0xff]  ;;  %v115_v13 = vld [vmem:[%s1218_s2] sm:$0xff]  ;;  %s780_s17 = sshll.u32 %s970_s3, 4  ;;  %s781_s17 = int_to_ptr.vmem [resolvable:$true] %s780_s17 }
  0x11   :  { %821 = vmatpush.msra.mxu1 %v79_v3  ;;  %177 = vmatpush.msra.mxu2 %v1036_v7  ;;  %v1085_v21 = vld [vmem:[%s1221_s5] ss:$0 sm:$0xff] }
  0x12   :  { %107 = vmatpush.msra.mxu0 %v78_v5  ;;  %244 = vmatpush.msra.mxu3 %v1036_v7  ;;  %v1094_v26 = vld [vmem:[%s1220_s4] ss:$0 sm:$0xff]  ;;  %s969_s4 = smov 96  }
  0x13   :  { %822 = vmatpush.msra.mxu1 %v78_v5  ;;  %178 = vmatpush.msra.mxu2 %v1046_v10 }
  0x14   :  { %465 = vmatpush.msrb.mxu0 %v1034_v6  ;;  %245 = vmatpush.msra.mxu3 %v1046_v10 }
  0x15   :  { %142 = vmatpush.msrb.mxu1 %v118_v8  ;;  %179 = vmatpush.msra.mxu2 %v1054_v12 }
  0x16   :  { %70 = vperm.xlu0 %832, %v65_v4   ;;  %466 = vmatpush.msrb.mxu0 %v1036_v7 }
  0x17   :  { %143 = vmatpush.msrb.mxu1 %v117_v9  ;;  %246 = vmatpush.msra.mxu3 %v1054_v12 }
  0x18   :  { %467 = vmatpush.msrb.mxu0 %v1046_v10  ;;  %180 = vmatmul.f32.vlgmr.msra.gmra.mxu2 %v967_v14 }
  0x19   :  { %144 = vmatpush.msrb.mxu1 %v116_v11  ;;  %317 = vmatpush.msrb.mxu2 %v1034_v6 }
  0x1a   :  { %391 = vmatpush.msrb.mxu3 %v1034_v6  ;;  %468 = vmatpush.msrb.mxu0 %v1054_v12 }
  0x1b   :  { %145 = vmatpush.msrb.mxu1 %v115_v13  ;;  %318 = vmatpush.msrb.mxu2 %v1036_v7 }
  0x1c   :  { %392 = vmatpush.msrb.mxu3 %v1036_v7 }
  0x1d   :  { %319 = vmatpush.msrb.mxu2 %v1046_v10 }
  0x1e   :  { %393 = vmatpush.msrb.mxu3 %v1046_v10 }
  0x1f   :  { %320 = vmatpush.msrb.mxu2 %v1054_v12 }
  0x20   :  { %394 = vmatpush.msrb.mxu3 %v1054_v12 }
  0x21   :  { %605 = vmatpush.msra.mxu2 %v1034_v6 }
  0x23   :  { %606 = vmatpush.msra.mxu2 %v1036_v7 }
  0x25   :  { %607 = vmatpush.msra.mxu2 %v1046_v10 }
  0x27   :  { %608 = vmatpush.msra.mxu2 %v1054_v12 }
  0x80   :  { %v68_v17 = vpop.permute.xlu0 %67 }
  0x81   :  { %vm72_vm2 = vcmp.eq.s32.totalorder %v68_v17, %v63_v16 }
  0x82   :  { %v796_v18 = vsel %vm72_vm2, 1.0, %v967_v14 }
  0x83   :  { %799 = vmatmul.msk.f32.vlgmr.msra.gmra.mxu0 %vm81_vm1, %v796_v18 }
  0x88   :  { %v71_v19 = vpop.permute.xlu0 %70 }
  0x89   :  { %vm73_vm3 = vcmp.eq.s32.totalorder %v71_v19, %v63_v16 }
  0x8a   :  { %v797_v20 = vsel %vm73_vm3, 1.0, %v967_v14 }
  0x8b   :  { %800 = vmatmul.msk.f32.vlgmr.msra.gmra.mxu1 %vm81_vm1, %v797_v20 }
  0x8c   :  { %532 = vmatpush.msra.mxu1 %v1034_v6 }
  0x8e   :  { %533 = vmatpush.msra.mxu1 %v1036_v7 }
  0x90   :  { %534 = vmatpush.msra.mxu1 %v1046_v10 }
  0x92   :  { %535 = vmatpush.msra.mxu1 %v1054_v12 }
  0x9b   :  { %v181_v22 = vpop.f32.mrf.mxu2 }
  0x9c   :  { %v182_v23 = vadd.f32 %v1085_v21, %v181_v22 }
  0x9e   :  { %205 = vrot.lane.b32.xlu1 %v182_v23, %s968_s27 }
 0x100   :  { %v109_v24 = vpop.f32.mrf.mxu0 }
 0x101   :  { %801 = vmatmul.msk.f32.vlgmr.msrb.gmra.mxu1 %vm123_vm4, %v109_v24 }
 0x108   :  { %v112_v25 = vpop.f32.mrf.mxu1 }
 0x109   :  { %802 = vmatmul.msk.f32.gmra.mxu1 %vm123_vm4, %v112_v25 }
 0x110   :  { %v206_v40 = vpop.permute.xlu1 %205 }
 0x17e   :  { %v147_v27 = vpop.f32.mrf.mxu1 }
 0x17f   :  { %v1097_v28 = vadd.f32 %v1094_v26, %v147_v27 }
 0x181   :  { %v184_v29 = vadd.f32 %v182_v23, %v1097_v28 }
 0x183   :  { %v803_v30 = vmul.f32 -1.442695, %v184_v29 }
 0x185   :  { %836 = vpow2.f32 %v803_v30 }
 0x18b   :  { %v837_v31 = vpop.eup %836 }
 0x18c   :  { %v188_v32 = vadd.f32 1.0, %v837_v31 }
 0x18e   :  { %838 = vrcp.f32 %v188_v32  ;;  %v200_v36 = vand.u32 2147483648, %v188_v32  ;;  %v198_v38 = vand.u32 2147483647, %v188_v32  ;;  %vm194_vm6 = vweird.f32 %v188_v32 }
 0x190   :  { %v201_v41 = vor.u32 1.1754944e-38, %v200_v36  ;;  %vm199_vm8 = vcmp.eq.f32.partialorder %v198_v38, 8.507059e+37 }
 0x194   :  { %v839_v33 = vpop.eup %838 }
 0x195   :  { %v190_v34 = vmul.f32 %v839_v33, %v188_v32  ;;  %vm195_vm5 = vweird.f32 %v839_v33 }
 0x196   :  { %vm196_vm7 = vmor %vm194_vm6, %vm195_vm5 }
 0x197   :  { %v191_v35 = vsub.f32 1.0, %v190_v34 }
 0x199   :  { %v192_v37 = vmul.f32 %v839_v33, %v191_v35 }
 0x19b   :  { %v193_v39 = vadd.f32 %v839_v33, %v192_v37 }
 0x19d   :  { %v197_v42 = vsel %vm196_vm7, %v839_v33, %v193_v39 }
 0x19e   :  { %v202_v43 = vsel %vm199_vm8, %v201_v41, %v197_v42 }
 0x19f   :  { %v208_v44 = vmul.f32 %v206_v40, %v202_v43  ;;  %v215_v48 = vsub.f32 1.0, %v202_v43  ;;  %v221_v50 = vmul.f32 0.0, %v202_v43 }
 0x1a1   :  { %210 = vrot.lane.b32.xlu1 %v208_v44, %s968_s27 }
 0x213   :  { %v211_v45 = vpop.permute.xlu1 %210 }
 0x214   :  { %v213_v46 = vadd.f32 %v211_v45, %v1097_v28 }
 0x216   :  { %840 = vtanh.f32 %v213_v46 }
 0x21c   :  { %v841_v47 = vpop.eup %840 }
 0x21d   :  { %217 = vrot.lane.b32.xlu2 %v841_v47, %s969_s4 }
 0x277   :  { %v218_v49 = vpop.permute.xlu2 %217 }
 0x278   :  { %v220_v51 = vmul.f32 %v218_v49, %v215_v48 }
 0x27a   :  { %v222_v52 = vadd.f32 %v221_v50, %v220_v51 }
 0x27c   :  { %224 = vrot.lane.b32.xlu2 %v222_v52, %s969_s4 }
 0x2d6   :  { %v225_v53 = vpop.permute.xlu2 %224 }
 0x2d7   :  { %228 = vst.msk [vmem:[#allocation2] sm:$0x3] %vm227_vm9, %v225_v53  ;;  %804 = vmatmul.msk.f32.vlgmr.msra.gmra.mxu3 %vm123_vm4, %v225_v53 }
 0x2d8   :  { %678 = vmatpush.msra.mxu3 %v1034_v6 }
 0x2da   :  { %679 = vmatpush.msra.mxu3 %v1036_v7 }
 0x2dc   :  { %680 = vmatpush.msra.mxu3 %v1046_v10 }
 0x2de   :  { %681 = vmatpush.msra.mxu3 %v1054_v12  ;;  %v290_v12 = vrot.slane %v222_v52, 6 }
 0x35a   :  { %v248_v54 = vpop.f32.mrf.mxu3 }
 0x35b   :  { %v249_v55 = vadd.f32 %v1085_v21, %v248_v54 }
 0x35d   :  { %v252_v56 = vrot.slane %v249_v55, 6 }
 0x35f   :  { %274 = vrot.lane.b32.xlu0 %v252_v56, %s968_s27  ;;  %v254_v57 = vadd.f32 %v252_v56, %v1097_v28 }
 0x361   :  { %v805_v58 = vmul.f32 -1.442695, %v254_v57 }
 0x363   :  { %842 = vpow2.f32 %v805_v58 }
 0x369   :  { %v843_v59 = vpop.eup %842 }
 0x36a   :  { %v258_v60 = vadd.f32 1.0, %v843_v59 }
 0x36c   :  { %844 = vrcp.f32 %v258_v60  ;;  %v270_v2 = vand.u32 2147483648, %v258_v60  ;;  %vm264_vm11 = vweird.f32 %v258_v60  ;;  %v268_v3 = vand.u32 2147483647, %v258_v60 }
 0x36e   :  { %v271_v5 = vor.u32 1.1754944e-38, %v270_v2  ;;  %vm269_vm13 = vcmp.eq.f32.partialorder %v268_v3, 8.507059e+37 }
 0x372   :  { %v845_v61 = vpop.eup %844 }
 0x373   :  { %v260_v62 = vmul.f32 %v845_v61, %v258_v60  ;;  %vm265_vm10 = vweird.f32 %v845_v61 }
 0x374   :  { %vm266_vm12 = vmor %vm264_vm11, %vm265_vm10 }
 0x375   :  { %v261_v63 = vsub.f32 1.0, %v260_v62 }
 0x377   :  { %v262_v0 = vmul.f32 %v845_v61, %v261_v63 }
 0x379   :  { %v263_v1 = vadd.f32 %v845_v61, %v262_v0 }
 0x37b   :  { %v267_v4 = vsel %vm266_vm12, %v845_v61, %v263_v1 }
 0x37c   :  { %v272_v7 = vsel %vm269_vm13, %v271_v5, %v267_v4 }
 0x37d   :  { %v284_v13 = vsub.f32 1.0, %v272_v7  ;;  %v292_v16 = vmul.f32 %v290_v12, %v272_v7 }
 0x3d1   :  { %v275_v6 = vpop.permute.xlu0 %274 }
 0x3d2   :  { %v277_v8 = vmul.f32 %v275_v6, %v272_v7 }
 0x3d4   :  { %279 = vrot.lane.b32.xlu1 %v277_v8, %s968_s27 }
 0x446   :  { %v280_v9 = vpop.permute.xlu1 %279 }
 0x447   :  { %v282_v10 = vadd.f32 %v280_v9, %v1097_v28 }
 0x449   :  { %846 = vtanh.f32 %v282_v10 }
 0x44f   :  { %v847_v11 = vpop.eup %846 }
 0x450   :  { %286 = vrot.lane.b32.xlu2 %v847_v11, %s969_s4 }
 0x4aa   :  { %v287_v14 = vpop.permute.xlu2 %286 }
 0x4ab   :  { %v289_v15 = vmul.f32 %v287_v14, %v284_v13 }
 0x4ad   :  { %v1116_v17 = vadd.f32 %v292_v16, %v289_v15 }
 0x4af   :  { %v300_v18 = vrot.slane %v1116_v17, 2  ;;  %v364_v46 = vrot.slane %v1116_v17, 6 }
 0x4b1   :  { %301 = vrot.lane.b32.xlu0 %v300_v18, %s969_s4 }
 0x523   :  { %v302_v19 = vpop.permute.xlu0 %301 }
 0x524   :  { %806 = vmatmul.msk.f32.vlgmr.msrb.gmra.mxu2 %vm123_vm4, %v302_v19 }
 0x5a7   :  { %v322_v20 = vpop.f32.mrf.mxu2 }
 0x5a8   :  { %v323_v22 = vadd.f32 %v1085_v21, %v322_v20 }
 0x5aa   :  { %v326_v23 = vrot.slane %v323_v22, 4  ;;  %v150_v22 = vpop.f32.mrf.mxu1 }
 0x5ac   :  { %348 = vrot.lane.b32.xlu1 %v326_v23, %s968_s27  ;;  %v328_v24 = vadd.f32 %v326_v23, %v1097_v28  ;;  %v1148_v23 = vadd.f32 %v1094_v26, %v150_v22 }
 0x5ae   :  { %v807_v25 = vmul.f32 -1.442695, %v328_v24 }
 0x5b0   :  { %848 = vpow2.f32 %v807_v25 }
 0x5b6   :  { %v849_v27 = vpop.eup %848 }
 0x5b7   :  { %v332_v29 = vadd.f32 1.0, %v849_v27 }
 0x5b9   :  { %850 = vrcp.f32 %v332_v29  ;;  %v344_v35 = vand.u32 2147483648, %v332_v29  ;;  %vm338_vm15 = vweird.f32 %v332_v29  ;;  %v342_v36 = vand.u32 2147483647, %v332_v29 }
 0x5bb   :  { %v345_v38 = vor.u32 1.1754944e-38, %v344_v35  ;;  %vm343_vm1 = vcmp.eq.f32.partialorder %v342_v36, 8.507059e+37 }
 0x5bf   :  { %v851_v30 = vpop.eup %850 }
 0x5c0   :  { %v334_v31 = vmul.f32 %v851_v30, %v332_v29  ;;  %vm339_vm14 = vweird.f32 %v851_v30 }
 0x5c1   :  { %vm340_vm0 = vmor %vm338_vm15, %vm339_vm14 }
 0x5c2   :  { %v335_v32 = vsub.f32 1.0, %v334_v31 }
 0x5c4   :  { %v336_v33 = vmul.f32 %v851_v30, %v335_v32 }
 0x5c6   :  { %v337_v34 = vadd.f32 %v851_v30, %v336_v33 }
 0x5c8   :  { %v341_v37 = vsel %vm340_vm0, %v851_v30, %v337_v34 }
 0x5c9   :  { %v346_v40 = vsel %vm343_vm1, %v345_v38, %v341_v37 }
 0x5ca   :  { %v358_v45 = vsub.f32 1.0, %v346_v40  ;;  %v366_v48 = vmul.f32 %v364_v46, %v346_v40 }
 0x61e   :  { %v349_v39 = vpop.permute.xlu1 %348 }
 0x61f   :  { %v351_v41 = vmul.f32 %v349_v39, %v346_v40 }
 0x621   :  { %353 = vrot.lane.b32.xlu2 %v351_v41, %s968_s27 }
 0x67b   :  { %v354_v42 = vpop.permute.xlu2 %353 }
 0x67c   :  { %v356_v43 = vadd.f32 %v354_v42, %v1097_v28 }
 0x67e   :  { %852 = vtanh.f32 %v356_v43 }
 0x684   :  { %v853_v44 = vpop.eup %852 }
 0x685   :  { %360 = vrot.lane.b32.xlu0 %v853_v44, %s969_s4 }
 0x6f7   :  { %v361_v47 = vpop.permute.xlu0 %360 }
 0x6f8   :  { %v363_v49 = vmul.f32 %v361_v47, %v358_v45 }
 0x6fa   :  { %v1128_v50 = vadd.f32 %v366_v48, %v363_v49 }
 0x6fc   :  { %v374_v51 = vrot.slane %v1128_v50, 4  ;;  %v438_v12 = vrot.slane %v1128_v50, 6 }
 0x6fe   :  { %375 = vrot.lane.b32.xlu1 %v374_v51, %s969_s4 }
 0x770   :  { %v376_v52 = vpop.permute.xlu1 %375 }
 0x771   :  { %808 = vmatmul.msk.f32.vlgmr.msrb.gmra.mxu3 %vm123_vm4, %v376_v52 }
 0x7f4   :  { %v396_v53 = vpop.f32.mrf.mxu3 }
 0x7f5   :  { %v397_v54 = vadd.f32 %v1085_v21, %v396_v53 }
 0x7f7   :  { %v400_v55 = vrot.slane %v397_v54, 2 }
 0x7f9   :  { %422 = vrot.lane.b32.xlu2 %v400_v55, %s968_s27  ;;  %v402_v56 = vadd.f32 %v400_v55, %v1097_v28 }
 0x7fb   :  { %v809_v57 = vmul.f32 -1.442695, %v402_v56 }
 0x7fd   :  { %854 = vpow2.f32 %v809_v57 }
 0x803   :  { %v855_v58 = vpop.eup %854 }
 0x804   :  { %v406_v59 = vadd.f32 1.0, %v855_v58 }
 0x806   :  { %856 = vrcp.f32 %v406_v59  ;;  %v418_v1 = vand.u32 2147483648, %v406_v59  ;;  %vm412_vm3 = vweird.f32 %v406_v59  ;;  %v416_v2 = vand.u32 2147483647, %v406_v59 }
 0x808   :  { %v419_v4 = vor.u32 1.1754944e-38, %v418_v1  ;;  %vm417_vm6 = vcmp.eq.f32.partialorder %v416_v2, 8.507059e+37 }
 0x80c   :  { %v857_v60 = vpop.eup %856 }
 0x80d   :  { %v408_v61 = vmul.f32 %v857_v60, %v406_v59  ;;  %vm413_vm2 = vweird.f32 %v857_v60 }
 0x80e   :  { %vm414_vm5 = vmor %vm412_vm3, %vm413_vm2 }
 0x80f   :  { %v409_v62 = vsub.f32 1.0, %v408_v61 }
 0x811   :  { %v410_v63 = vmul.f32 %v857_v60, %v409_v62 }
 0x813   :  { %v411_v0 = vadd.f32 %v857_v60, %v410_v63 }
 0x815   :  { %v415_v3 = vsel %vm414_vm5, %v857_v60, %v411_v0 }
 0x816   :  { %v420_v6 = vsel %vm417_vm6, %v419_v4, %v415_v3 }
 0x817   :  { %v432_v11 = vsub.f32 1.0, %v420_v6  ;;  %v440_v14 = vmul.f32 %v438_v12, %v420_v6 }
 0x853   :  { %v423_v5 = vpop.permute.xlu2 %422 }
 0x854   :  { %v425_v7 = vmul.f32 %v423_v5, %v420_v6 }
 0x856   :  { %427 = vrot.lane.b32.xlu0 %v425_v7, %s968_s27 }
 0x8c8   :  { %v428_v8 = vpop.permute.xlu0 %427 }
 0x8c9   :  { %v430_v9 = vadd.f32 %v428_v8, %v1097_v28 }
 0x8cb   :  { %858 = vtanh.f32 %v430_v9 }
 0x8d1   :  { %v859_v10 = vpop.eup %858 }
 0x8d2   :  { %434 = vrot.lane.b32.xlu1 %v859_v10, %s969_s4 }
 0x944   :  { %v435_v13 = vpop.permute.xlu1 %434 }
 0x945   :  { %v437_v15 = vmul.f32 %v435_v13, %v432_v11 }
 0x947   :  { %v1140_v16 = vadd.f32 %v440_v14, %v437_v15 }
 0x949   :  { %v448_v18 = vrot.slane %v1140_v16, 6 }
 0x94b   :  { %449 = vrot.lane.b32.xlu2 %v448_v18, %s969_s4 }
 0x9a5   :  { %v450_v19 = vpop.permute.xlu2 %449 }
 0x9a6   :  { %810 = vmatmul.msk.f32.vlgmr.msrb.gmra.mxu0 %vm123_vm4, %v450_v19 }
 0xa23   :  { %v470_v28 = vpop.f32.mrf.mxu0 }
 0xa24   :  { %v471_v20 = vadd.f32 %v1085_v21, %v470_v28 }
 0xa26   :  { %494 = vrot.lane.b32.xlu0 %v471_v20, %s968_s27  ;;  %v473_v24 = vadd.f32 %v471_v20, %v1148_v23 }
 0xa28   :  { %v811_v25 = vmul.f32 -1.442695, %v473_v24 }
 0xa2a   :  { %860 = vpow2.f32 %v811_v25 }
 0xa30   :  { %v861_v27 = vpop.eup %860 }
 0xa31   :  { %v477_v29 = vadd.f32 1.0, %v861_v27 }
 0xa33   :  { %862 = vrcp.f32 %v477_v29  ;;  %v489_v35 = vand.u32 2147483648, %v477_v29  ;;  %vm483_vm8 = vweird.f32 %v477_v29  ;;  %v487_v36 = vand.u32 2147483647, %v477_v29 }
 0xa35   :  { %v490_v26 = vor.u32 1.1754944e-38, %v489_v35  ;;  %vm488_vm11 = vcmp.eq.f32.partialorder %v487_v36, 8.507059e+37 }
 0xa39   :  { %v863_v30 = vpop.eup %862 }
 0xa3a   :  { %v479_v31 = vmul.f32 %v863_v30, %v477_v29  ;;  %vm484_vm7 = vweird.f32 %v863_v30 }
 0xa3b   :  { %vm485_vm10 = vmor %vm483_vm8, %vm484_vm7  ;;  %vm298_vm8 = vcmask 257026  }
 0xa3c   :  { %v480_v32 = vsub.f32 1.0, %v479_v31 }
 0xa3e   :  { %v481_v33 = vmul.f32 %v863_v30, %v480_v32 }
 0xa40   :  { %v482_v34 = vadd.f32 %v863_v30, %v481_v33 }
 0xa42   :  { %v486_v37 = vsel %vm485_vm10, %v863_v30, %v482_v34  ;;  %vm372_vm10 = vcmask 259076  }
 0xa43   :  { %v491_v39 = vsel %vm488_vm11, %v490_v26, %v486_v37  ;;  %vm446_vm11 = vcmask 261126  }
 0xa44   :  { %v504_v44 = vsub.f32 1.0, %v491_v39  ;;  %v511_v46 = vmul.f32 %v491_v39, %v448_v18 }
 0xa98   :  { %v495_v38 = vpop.permute.xlu0 %494 }
 0xa99   :  { %v497_v40 = vmul.f32 %v495_v38, %v491_v39 }
 0xa9b   :  { %499 = vrot.lane.b32.xlu1 %v497_v40, %s968_s27 }
 0xb0d   :  { %v500_v41 = vpop.permute.xlu1 %499 }
 0xb0e   :  { %v502_v42 = vadd.f32 %v500_v41, %v1148_v23 }
 0xb10   :  { %864 = vtanh.f32 %v502_v42 }
 0xb16   :  { %v865_v43 = vpop.eup %864 }
 0xb17   :  { %506 = vrot.lane.b32.xlu2 %v865_v43, %s969_s4 }
 0xb71   :  { %v507_v45 = vpop.permute.xlu2 %506 }
 0xb72   :  { %v509_v47 = vmul.f32 %v507_v45, %v504_v44 }
 0xb74   :  { %v512_v48 = vadd.f32 %v511_v46, %v509_v47 }
 0xb76   :  { %514 = vrot.lane.b32.xlu0 %v512_v48, %s969_s4  ;;  %v579_v9 = vrot.slane %v512_v48, 6 }
 0xbe8   :  { %v515_v49 = vpop.permute.xlu0 %514 }
 0xbe9   :  { %517 = vst.msk [vmem:[#allocation2 + $0x8] sm:$0x3] %vm227_vm9, %v515_v49  ;;  %812 = vmatmul.msk.f32.vlgmr.msra.gmra.mxu1 %vm123_vm4, %v515_v49 }
 0xc66   :  { %v537_v51 = vpop.f32.mrf.mxu1 }
 0xc67   :  { %v538_v52 = vadd.f32 %v1085_v21, %v537_v51 }
 0xc69   :  { %v541_v53 = vrot.slane %v538_v52, 6 }
 0xc6b   :  { %563 = vrot.lane.b32.xlu1 %v541_v53, %s968_s27  ;;  %v543_v54 = vadd.f32 %v541_v53, %v1148_v23 }
 0xc6d   :  { %v813_v55 = vmul.f32 -1.442695, %v543_v54 }
 0xc6f   :  { %866 = vpow2.f32 %v813_v55 }
 0xc75   :  { %v867_v56 = vpop.eup %866 }
 0xc76   :  { %v547_v57 = vadd.f32 1.0, %v867_v56 }
 0xc78   :  { %868 = vrcp.f32 %v547_v57  ;;  %v559_v63 = vand.u32 2147483648, %v547_v57  ;;  %vm553_vm12 = vweird.f32 %v547_v57  ;;  %v557_v0 = vand.u32 2147483647, %v547_v57 }
 0xc7a   :  { %v560_v2 = vor.u32 1.1754944e-38, %v559_v63  ;;  %vm558_vm14 = vcmp.eq.f32.partialorder %v557_v0, 8.507059e+37 }
 0xc7e   :  { %v869_v58 = vpop.eup %868 }
 0xc7f   :  { %v549_v59 = vmul.f32 %v869_v58, %v547_v57  ;;  %vm554_vm9 = vweird.f32 %v869_v58 }
 0xc80   :  { %vm555_vm13 = vmor %vm553_vm12, %vm554_vm9  ;;  %vm773_vm9 = vcmask 130048  }
 0xc81   :  { %v550_v60 = vsub.f32 1.0, %v549_v59 }
 0xc83   :  { %v551_v61 = vmul.f32 %v869_v58, %v550_v60 }
 0xc85   :  { %v552_v62 = vadd.f32 %v869_v58, %v551_v61 }
 0xc87   :  { %v556_v1 = vsel %vm555_vm13, %v869_v58, %v552_v62 }
 0xc88   :  { %v561_v4 = vsel %vm558_vm14, %v560_v2, %v556_v1 }
 0xc89   :  { %v573_v10 = vsub.f32 1.0, %v561_v4  ;;  %v581_v13 = vmul.f32 %v579_v9, %v561_v4 }
 0xcdd   :  { %v564_v3 = vpop.permute.xlu1 %563 }
 0xcde   :  { %v566_v5 = vmul.f32 %v564_v3, %v561_v4 }
 0xce0   :  { %568 = vrot.lane.b32.xlu2 %v566_v5, %s968_s27 }
 0xd3a   :  { %v569_v6 = vpop.permute.xlu2 %568 }
 0xd3b   :  { %v571_v7 = vadd.f32 %v569_v6, %v1148_v23 }
 0xd3d   :  { %870 = vtanh.f32 %v571_v7 }
 0xd43   :  { %v871_v8 = vpop.eup %870 }
 0xd44   :  { %575 = vrot.lane.b32.xlu0 %v871_v8, %s969_s4 }
 0xdb6   :  { %v576_v11 = vpop.permute.xlu0 %575 }
 0xdb7   :  { %v578_v12 = vmul.f32 %v576_v11, %v573_v10 }
 0xdb9   :  { %v582_v14 = vadd.f32 %v581_v13, %v578_v12  ;;  %v737_v12 = vld [vmem:[%s1222_s6 + $0x8] sm:$0xff]  ;;  %v736_v13 = vld [vmem:[%s1222_s6] sm:$0xff] }
 0xdbb   :  { %v588_v15 = vrot.slane %v582_v14, 2  ;;  %v652_v44 = vrot.slane %v582_v14, 6 }
 0xdbd   :  { %589 = vrot.lane.b32.xlu1 %v588_v15, %s969_s4 }
 0xe2f   :  { %v590_v18 = vpop.permute.xlu1 %589 }
 0xe30   :  { %814 = vmatmul.msk.f32.vlgmr.msra.gmra.mxu2 %vm123_vm4, %v590_v18 }
 0xeb3   :  { %v610_v19 = vpop.f32.mrf.mxu2 }
 0xeb4   :  { %v611_v28 = vadd.f32 %v1085_v21, %v610_v19 }
 0xeb6   :  { %v614_v20 = vrot.slane %v611_v28, 4 }
 0xeb8   :  { %636 = vrot.lane.b32.xlu2 %v614_v20, %s968_s27  ;;  %v616_v22 = vadd.f32 %v614_v20, %v1148_v23 }
 0xeba   :  { %v815_v24 = vmul.f32 -1.442695, %v616_v22 }
 0xebc   :  { %872 = vpow2.f32 %v815_v24 }
 0xec2   :  { %v873_v25 = vpop.eup %872 }
 0xec3   :  { %v620_v27 = vadd.f32 1.0, %v873_v25 }
 0xec5   :  { %874 = vrcp.f32 %v620_v27  ;;  %v632_v34 = vand.u32 2147483648, %v620_v27  ;;  %vm626_vm0 = vweird.f32 %v620_v27  ;;  %v630_v35 = vand.u32 2147483647, %v620_v27 }
 0xec7   :  { %v633_v37 = vor.u32 1.1754944e-38, %v632_v34  ;;  %vm631_vm2 = vcmp.eq.f32.partialorder %v630_v35, 8.507059e+37 }
 0xecb   :  { %v875_v29 = vpop.eup %874 }
 0xecc   :  { %v622_v30 = vmul.f32 %v875_v29, %v620_v27  ;;  %vm627_vm15 = vweird.f32 %v875_v29  ;;  %v835_v27 = vld [vmem:[%s1223_s7] ss:$0 sm:$0xff] }
 0xecd   :  { %vm628_vm1 = vmor %vm626_vm0, %vm627_vm15 }
 0xece   :  { %v623_v31 = vsub.f32 1.0, %v622_v30 }
 0xed0   :  { %v624_v32 = vmul.f32 %v875_v29, %v623_v31 }
 0xed2   :  { %v625_v33 = vadd.f32 %v875_v29, %v624_v32 }
 0xed4   :  { %v629_v36 = vsel %vm628_vm1, %v875_v29, %v625_v33 }
 0xed5   :  { %v634_v38 = vsel %vm631_vm2, %v633_v37, %v629_v36 }
 0xed6   :  { %v646_v43 = vsub.f32 1.0, %v634_v38  ;;  %v654_v46 = vmul.f32 %v652_v44, %v634_v38 }
 0xf12   :  { %v637_v26 = vpop.permute.xlu2 %636 }
 0xf13   :  { %v639_v39 = vmul.f32 %v637_v26, %v634_v38 }
 0xf15   :  { %641 = vrot.lane.b32.xlu0 %v639_v39, %s968_s27 }
 0xf87   :  { %v642_v40 = vpop.permute.xlu0 %641 }
 0xf88   :  { %v644_v41 = vadd.f32 %v642_v40, %v1148_v23 }
 0xf8a   :  { %876 = vtanh.f32 %v644_v41 }
 0xf90   :  { %v877_v42 = vpop.eup %876 }
 0xf91   :  { %648 = vrot.lane.b32.xlu1 %v877_v42, %s969_s4 }
0x1003   :  { %v649_v45 = vpop.permute.xlu1 %648 }
0x1004   :  { %v651_v47 = vmul.f32 %v649_v45, %v646_v43 }
0x1006   :  { %v1171_v48 = vadd.f32 %v654_v46, %v651_v47 }
0x1008   :  { %v661_v49 = vrot.slane %v1171_v48, 4 }
0x100a   :  { %662 = vrot.lane.b32.xlu2 %v661_v49, %s969_s4 }
0x1064   :  { %v663_v51 = vpop.permute.xlu2 %662 }
0x1065   :  { %816 = vmatmul.msk.f32.vlgmr.msra.gmra.mxu3 %vm123_vm4, %v663_v51 }
0x10e8   :  { %v683_v52 = vpop.f32.mrf.mxu3 }
0x10e9   :  { %v684_v53 = vadd.f32 %v1085_v21, %v683_v52 }
0x10eb   :  { %v687_v54 = vrot.slane %v684_v53, 2 }
0x10ed   :  { %709 = vrot.lane.b32.xlu0 %v687_v54, %s968_s27  ;;  %v689_v55 = vadd.f32 %v687_v54, %v1148_v23 }
0x10ef   :  { %v817_v56 = vmul.f32 -1.442695, %v689_v55 }
0x10f1   :  { %878 = vpow2.f32 %v817_v56 }
0x10f5   :  { %295 = vrot.lane.b32.xlu0 %v1116_v17, %s969_s4 }
0x10f7   :  { %v879_v57 = vpop.eup %878 }
0x10f8   :  { %v693_v58 = vadd.f32 1.0, %v879_v57 }
0x10fa   :  { %880 = vrcp.f32 %v693_v58  ;;  %v705_v63 = vand.u32 2147483648, %v693_v58  ;;  %vm699_vm5 = vweird.f32 %v693_v58  ;;  %v703_v0 = vand.u32 2147483647, %v693_v58 }
0x10fc   :  { %v706_v1 = vor.u32 1.1754944e-38, %v705_v63  ;;  %vm704_vm7 = vcmp.eq.f32.partialorder %v703_v0, 8.507059e+37 }
0x10fd   :  { %584 = vrot.lane.b32.xlu0 %v582_v14, %s969_s4  ;;  %v725_v14 = vrot.slane %v1171_v48, 6 }
0x1100   :  { %v881_v59 = vpop.eup %880 }
0x1101   :  { %v695_v60 = vmul.f32 %v881_v59, %v693_v58  ;;  %vm700_vm3 = vweird.f32 %v881_v59 }
0x1102   :  { %vm701_vm6 = vmor %vm699_vm5, %vm700_vm3 }
0x1103   :  { %v696_v61 = vsub.f32 1.0, %v695_v60 }
0x1105   :  { %v697_v62 = vmul.f32 %v881_v59, %v696_v61 }
0x1107   :  { %v698_v21 = vadd.f32 %v881_v59, %v697_v62 }
0x1109   :  { %v702_v17 = vsel %vm701_vm6, %v881_v59, %v698_v21 }
0x110a   :  { %v707_v3 = vsel %vm704_vm7, %v706_v1, %v702_v17 }
0x110b   :  { %v727_v18 = vmul.f32 %v725_v14, %v707_v3 }
0x115f   :  { %v710_v2 = vpop.permute.xlu0 %709 }
0x1160   :  { %v712_v4 = vmul.f32 %v710_v2, %v707_v3 }
0x1162   :  { %714 = vrot.lane.b32.xlu1 %v712_v4, %s968_s27 }
0x1167   :  { %v296_v5 = vpop.permute.xlu0 %295 }
0x1168   :  { %299 = vst.msk [vmem:[#allocation2] sm:$0xc] %vm298_vm8, %v296_v5 }
0x116a   :  { %369 = vrot.lane.b32.xlu1 %v1128_v50, %s969_s4  ;;  %v739_v50 = vld [vmem:[%s1222_s6 + $0x18] sm:$0xff] }
0x116b   :  { %762 = vmatpush.msra.mxu0 %v739_v50 }
0x116f   :  { %v585_v6 = vpop.permute.xlu0 %584 }
0x1170   :  { %587 = vst.msk [vmem:[#allocation2 + $0x8] sm:$0xc] %vm298_vm8, %v585_v6 }
0x1172   :  { %657 = vrot.lane.b32.xlu1 %v1171_v48, %s969_s4 }
0x11d4   :  { %v715_v7 = vpop.permute.xlu1 %714 }
0x11d5   :  { %v717_v8 = vadd.f32 %v715_v7, %v1148_v23  ;;  %v738_v23 = vld [vmem:[%s1222_s6 + $0x10] sm:$0xff] }
0x11d6   :  { %763 = vmatpush.msra.mxu0 %v738_v23 }
0x11d7   :  { %882 = vtanh.f32 %v717_v8 }
0x11d8   :  { %764 = vmatpush.msra.mxu0 %v737_v12 }
0x11da   :  { %765 = vmatpush.msra.mxu0 %v736_v13 }
0x11dc   :  { %v370_v9 = vpop.permute.xlu1 %369 }
0x11dd   :  { %v883_v10 = vpop.eup %882  ;;  %373 = vst.msk [vmem:[#allocation2] sm:$0x30] %vm372_vm10, %v370_v9 }
0x11de   :  { %721 = vrot.lane.b32.xlu2 %v883_v10, %s969_s4 }
0x11e4   :  { %v658_v11 = vpop.permute.xlu1 %657 }
0x11e5   :  { %660 = vst.msk [vmem:[#allocation2 + $0x8] sm:$0x30] %vm372_vm10, %v658_v11 }
0x11e6   :  { %443 = vrot.lane.b32.xlu2 %v1140_v16, %s969_s4  ;;  %v719_v16 = vsub.f32 1.0, %v707_v3 }
0x1238   :  { %v722_v15 = vpop.permute.xlu2 %721 }
0x1239   :  { %v724_v19 = vmul.f32 %v722_v15, %v719_v16 }
0x123b   :  { %v728_v28 = vadd.f32 %v727_v18, %v724_v19 }
0x123d   :  { %730 = vrot.lane.b32.xlu2 %v728_v28, %s969_s4 }
0x1240   :  { %v444_v20 = vpop.permute.xlu2 %443 }
0x1241   :  { %447 = vst.msk [vmem:[#allocation2] sm:$0xc0] %vm446_vm11, %v444_v20 }
0x1248   :  { %v734_v22 = vld [vmem:[#allocation2] sm:$0xff] }
0x1249   :  { %818 = vmatmul.msk.f32.vlgmr.msra.gmra.mxu0 %vm123_vm4, %v734_v22 }
0x1297   :  { %v731_v24 = vpop.permute.xlu2 %730 }
0x1298   :  { %733 = vst.msk [vmem:[#allocation2 + $0x8] sm:$0xc0] %vm446_vm11, %v731_v24 }
0x129f   :  { %v735_v25 = vld [vmem:[#allocation2 + $0x8] sm:$0xff] }
0x12a0   :  { %819 = vmatmul.msk.f32.gmra.mxu0 %vm123_vm4, %v735_v25 }
0x12c6   :  { %v767_v29 = vpop.f32.mrf.mxu0 }
0x12c7   :  { %v768_v30 = vadd.f32 %v835_v27, %v767_v29 }
0x12c9   :  { %774 = vst.msk [vmem:[#allocation8] sm:$0xff] %vm773_vm9, %v768_v30 }
0x131d   :  { %v770_v31 = vpop.f32.mrf.mxu0 }
0x131e   :  { %v771_v32 = vadd.f32 %v835_v27, %v770_v31 }
0x1320   :  { %775 = vst.msk [vmem:[#allocation8 + $0x8] sm:$0xff] %vm773_vm9, %v771_v32 }
0x1321   :  { %788 = dma.vmem_to_hbm [thread:$0]  %s781_s17, 256, %s783_s20, [#allocation5], %s963_s13, %s963_s13, %s964_s14  }
0x1322   :  { %960 = dma.done.wait [#allocation5], 256  }
0x1323   :  { %961 = vsyncadd [#allocation5], 4294967040 }
0x1324   :  { %793 = vsyncpa [#allocation4], 1 }
0x1325   :  { %794 = vsyncpa [#allocation7], 1 }
0x1326   :  { %795 = vsyncpa [#allocation5], 1 }

</bundles_post_ra>
